<compile_context>
chip_gen: v7x
topology: tpu7x:2x2x1
jax: 0.10.0
libtpu: 0.0.40
codegen_flags: <defaults>
</compile_context>

<pallas_src>
import functools

import jax
import jax.numpy as jnp
import numpy as np
from jax import lax
from jax.experimental import pallas as pl
from jax.experimental.pallas import tpu as pltpu


def _round_up(x, m):
    return (x + m - 1) // m * m


def _notears_mlp_kernel(d, layer_specs, x_ref, w1_ref, b1_ref, *rest):
    """Transposed forward: out^T = f(x^T), batch on the lane axis.

    x_ref  : [D, TN]             f32   (x^T batch tile, TN on lanes)
    w1_ref : [D*M1, D]           f32   (fused fc1_pos - fc1_neg weight)
    b1_ref : [D*M1, 1]           f32   (fused fc1 bias, lane-broadcast)
    per locally-connected layer (in `rest`), either
      blockdiag : w [D*M_out, D*M_in], b [D*M_out, 1]
      grouped   : w [D, M_in, M_out],  b [D*M_out, 1]
    out_ref: [D, TN]             f32   (out^T; final M_out == 1)
    """
    out_ref = rest[-1]
    fc2_refs = rest[:-1]

    # fc1 (pos - neg fused wrapper-side):  h^T = W1 @ x^T + b1.
    h = jnp.dot(w1_ref[...], x_ref[...],
                preferred_element_type=jnp.float32) + b1_ref[...]   # [D*M1, TN]

    for l, (mode, m_in, m_out) in enumerate(layer_specs):
        w = fc2_refs[2 * l][...]
        b = fc2_refs[2 * l + 1][...]
        h = jax.nn.sigmoid(h)                 # f32 elementwise (VPU/EUP)
        if mode == "blockdiag":
            # One lane-dense MXU matmul: [D*M_out, D*M_in] @ [D*M_in, TN].
            h = jnp.dot(w, h, preferred_element_type=jnp.float32) + b
        else:  # "grouped": large-D path, batched over the D feature groups.
            tn = h.shape[-1]
            hb = h.reshape(d, m_in, tn)                              # [D, M_in, TN]
            hb = lax.dot_general(
                w, hb, (((1,), (1,)), ((0,), (0,))),
                preferred_element_type=jnp.float32)                  # [D, M_out, TN]
            h = hb.reshape(d * m_out, tn) + b

    # squeeze(dim=2): final M_out == 1, so h is already [D, TN] == out^T.
    out_ref[...] = h.astype(out_ref.dtype)


def _resident_spec(shape):
    """Full-array, grid-invariant BlockSpec; single-buffered where supported."""
    nd = len(shape)

    def idx(i, _nd=nd):
        return (0,) * _nd

    try:
        return pl.BlockSpec(shape, idx, pipeline_mode=pl.Buffered(1))
    except (TypeError, AttributeError):
        return pl.BlockSpec(shape, idx)


def notears_mlp_forward(x, params, dims, *, block_n=None, blockdiag_max_width=512):
    n, d = x.shape
    assert len(dims) >= 2 and dims[0] == d and dims[-1] == 1
    m1 = dims[1]
    f32 = jnp.float32

    # ---- wrapper-side parameter prep (layout only; forward semantics unchanged).
    w1 = (params["fc1_pos_w"] - params["fc1_neg_w"]).astype(f32)          # [D*M1, D]
    b1 = (params["fc1_pos_b"] - params["fc1_neg_b"]).reshape(d * m1, 1).astype(f32)

    layer_specs = []
    fc2_args = []
    resident_bytes = 4 * (w1.size + b1.size)
    for (w, b) in params["fc2"]:
        _, m_in, m_out = w.shape
        b_arg = b.reshape(d * m_out, 1).astype(f32)                       # [D*M_out, 1]
        if d * m_in <= blockdiag_max_width:
            # Transposed block-diagonal weight: BDT[j*M_out+o, k*M_in+m]
            #   = delta(j,k) * w[j, m, o]   ->  one MXU matmul per layer.
            eye = jnp.eye(d, dtype=f32)
            w_arg = jnp.einsum("jmo,jk->jokm", w.astype(f32), eye)
            w_arg = w_arg.reshape(d * m_out, d * m_in)
            layer_specs.append(("blockdiag", m_in, m_out))
        else:
            # Large D: keep the dense [D, M_in, M_out] weight and batch over D
            # in-kernel (avoids O(D) block-diag flop / weight-VMEM inflation).
            w_arg = w.astype(f32)
            layer_specs.append(("grouped", m_in, m_out))
        fc2_args.append((w_arg, b_arg))
        resident_bytes += 4 * (w_arg.size + b_arg.size)

    # ---- batch tiling: TN on the 128-lane axis, size from a VMEM budget.
    act_widths = [d * m1] + [d * mo for (_, _, mo) in layer_specs]
    # f32 bytes per batch column: double-buffered x^T / out^T tiles plus a
    # conservative 2x over all intermediate activation widths.
    per_col_bytes = 4 * (2 * d + 2 * d + 2 * sum(act_widths))
    tile_budget = 40 << 20
    avail = max(tile_budget - resident_bytes, 512 << 10)
    block_cap = max(128, min(2048, (avail // per_col_bytes) // 128 * 128))

    n_lane = _round_up(n, 128)
    if block_n is None:
        block_n = min(block_cap, n_lane)
        # Keep >= 2 grid steps when the batch allows it so the "parallel"
        # grid axis can shard across both v7x TensorCores.
        if n_lane >= 2 * 128 and block_n >= n_lane:
            block_n = _round_up(-(-n_lane // 2), 128)
    block_n = max(128, _round_up(int(block_n), 128))
    n_pad = _round_up(n, block_n)

    xT = jnp.pad(x.astype(f32), ((0, n_pad - n), (0, 0))).T               # [D, n_pad]
    grid = (n_pad // block_n,)

    in_specs = [pl.BlockSpec((d, block_n), lambda i: (0, i)),             # x^T tile
                _resident_spec(w1.shape), _resident_spec(b1.shape)]
    args = [xT, w1, b1]
    for (w_arg, b_arg) in fc2_args:
        in_specs += [_resident_spec(w_arg.shape), _resident_spec(b_arg.shape)]
        args += [w_arg, b_arg]
    out_spec = pl.BlockSpec((d, block_n), lambda i: (0, i))               # out^T tile

    vmem_need = resident_bytes + block_n * per_col_bytes
    vmem_limit = int(min(max(int(vmem_need * 1.5), 32 << 20), 48 << 20))

    kernel = functools.partial(_notears_mlp_kernel, d, tuple(layer_specs))
    outT = pl.pallas_call(
        kernel,
        out_shape=jax.ShapeDtypeStruct((d, n_pad), f32),
        grid=grid,
        in_specs=in_specs,
        out_specs=out_spec,
        compiler_params=pltpu.CompilerParams(
            dimension_semantics=("parallel",),
            vmem_limit_bytes=vmem_limit),
    )(*args)

    return outT.T[:n]                                                     # [N, D]


def make_params(key, dims, bias=True):
    """Deterministic synthetic init matching the module's parameter shapes."""
    d, m1 = dims[0], dims[1]
    n_keys = 4 + 2 * (len(dims) - 2)
    keys = jax.random.split(key, n_keys)

    def u(k, shape, bound):
        return jax.random.uniform(k, shape, jnp.float32, -bound, bound)

    lin_bound = 1.0 / np.sqrt(d)   # ~ PyTorch Linear default init bound
    params = {
        "fc1_pos_w": u(keys[0], (d * m1, d), lin_bound),
        "fc1_pos_b": u(keys[1], (d * m1,), lin_bound) if bias
                     else jnp.zeros((d * m1,), jnp.float32),
        "fc1_neg_w": u(keys[2], (d * m1, d), lin_bound),
        "fc1_neg_b": u(keys[3], (d * m1,), lin_bound) if bias
                     else jnp.zeros((d * m1,), jnp.float32),
        "fc2": [],
    }
    k_idx = 4
    for l in range(len(dims) - 2):
        m_in, m_out = dims[l + 1], dims[l + 2]
        lc_bound = 1.0 / np.sqrt(m_in)
        w = u(keys[k_idx], (d, m_in, m_out), lc_bound)
        b = (u(keys[k_idx + 1], (d, m_out), lc_bound) if bias
             else jnp.zeros((d, m_out), jnp.float32))
        params["fc2"].append((w, b))
        k_idx += 2
    return params


def notears_mlp_reference(x, params, dims):
    """Pure-JAX f32 reference mirroring the PyTorch forward exactly."""
    d, m1 = dims[0], dims[1]
    h = (x @ params["fc1_pos_w"].T + params["fc1_pos_b"]) \
        - (x @ params["fc1_neg_w"].T + params["fc1_neg_b"])
    h = h.reshape(-1, d, m1)
    for (w, b) in params["fc2"]:
        h = jax.nn.sigmoid(h)
        h = jnp.einsum("ndm,dmo->ndo", h, w) + b[None, :, :]
    return h[:, :, 0]


if __name__ == "__main__":
    dims = [8, 16, 8, 1]   # d=8 variables, hidden widths 16 and 8, output dim 1
    n = 200                # batch size (typical NOTEARS sample count)

    key = jax.random.PRNGKey(0)
    kx, kp = jax.random.split(key)
    x = jax.random.normal(kx, (n, dims[0]), jnp.float32)
    params = make_params(kp, dims, bias=True)

    # n=200 -> 256 lane-padded batch, block_n=128 -> grid=(2,): exercises the
    # pipelined, megacore-shardable batch grid plus the padded-row slice.
    out = notears_mlp_forward(x, params, dims)
    out = jax.block_until_ready(out)
    out_np = np.asarray(out)

    # Everything is f32; the only deviation on real hardware is the MXU's
    # default f32 matmul precision, so keep a modest tolerance.
    ref = np.asarray(notears_mlp_reference(x, params, dims))
    np.testing.assert_allclose(out_np, ref, rtol=2e-2, atol=5e-3)

    print("KERNEL_OK")
</pallas_src>

<mosaic_0001>
module attributes {stable_mosaic.version = 11 : i64} {
  func.func @_notears_mlp_kernel(%arg0: i32, %arg1: memref<8x128xf32, #tpu.memory_space<vmem>>, %arg2: memref<128x8xf32, #tpu.memory_space<vmem>>, %arg3: memref<128x1xf32, #tpu.memory_space<vmem>>, %arg4: memref<64x128xf32, #tpu.memory_space<vmem>>, %arg5: memref<64x1xf32, #tpu.memory_space<vmem>>, %arg6: memref<8x64xf32, #tpu.memory_space<vmem>>, %arg7: memref<8x1xf32, #tpu.memory_space<vmem>>, %arg8: memref<8x128xf32, #tpu.memory_space<vmem>>) attributes {dimension_semantics = [#tpu.dimension_semantics<parallel>], iteration_bounds = array<i64: 2>, scalar_prefetch = 0 : i64, scratch_operands = 0 : i64, tpu.core_type = #tpu.core_type<tc>, window_params = [{transform_indices = @transform_0, window_bounds = array<i64: 8, 128>}, {pipeline_mode = #tpu.pipeline_mode<synchronous>, transform_indices = @transform_1, window_bounds = array<i64: 128, 8>}, {pipeline_mode = #tpu.pipeline_mode<synchronous>, transform_indices = @transform_2, window_bounds = array<i64: 128, 1>}, {pipeline_mode = #tpu.pipeline_mode<synchronous>, transform_indices = @transform_3, window_bounds = array<i64: 64, 128>}, {pipeline_mode = #tpu.pipeline_mode<synchronous>, transform_indices = @transform_4, window_bounds = array<i64: 64, 1>}, {pipeline_mode = #tpu.pipeline_mode<synchronous>, transform_indices = @transform_5, window_bounds = array<i64: 8, 64>}, {pipeline_mode = #tpu.pipeline_mode<synchronous>, transform_indices = @transform_6, window_bounds = array<i64: 8, 1>}, {transform_indices = @transform_7, window_bounds = array<i64: 8, 128>}]} {
    %c0 = arith.constant 0 : index
    %c0_0 = arith.constant 0 : index
    %0 = vector.load %arg2[%c0, %c0_0] : memref<128x8xf32, #tpu.memory_space<vmem>>, vector<128x8xf32>
    %c0_1 = arith.constant 0 : index
    %c0_2 = arith.constant 0 : index
    %1 = vector.load %arg1[%c0_1, %c0_2] : memref<8x128xf32, #tpu.memory_space<vmem>>, vector<8x128xf32>
    %cst = arith.constant dense<0.000000e+00> : vector<128x128xf32>
    %2 = tpu.matmul %0, %1, %cst {dimension_numbers = #tpu.dot_dimension_numbers<[1], [0], [0], [1], [0, 0, 1, 1], [], []>} : vector<128x8xf32>, vector<8x128xf32>, vector<128x128xf32> -> vector<128x128xf32>
    %c0_3 = arith.constant 0 : index
    %c0_4 = arith.constant 0 : index
    %3 = vector.load %arg3[%c0_3, %c0_4] : memref<128x1xf32, #tpu.memory_space<vmem>>, vector<128x1xf32>
    %4 = vector.broadcast %3 : vector<128x1xf32> to vector<128x128xf32>
    %5 = arith.addf %2, %4 : vector<128x128xf32>
    %c0_5 = arith.constant 0 : index
    %c0_6 = arith.constant 0 : index
    %6 = vector.load %arg4[%c0_5, %c0_6] : memref<64x128xf32, #tpu.memory_space<vmem>>, vector<64x128xf32>
    %c0_7 = arith.constant 0 : index
    %c0_8 = arith.constant 0 : index
    %7 = vector.load %arg5[%c0_7, %c0_8] : memref<64x1xf32, #tpu.memory_space<vmem>>, vector<64x1xf32>
    %8 = arith.negf %5 : vector<128x128xf32>
    %9 = math.exp %8 : vector<128x128xf32>
    %cst_9 = arith.constant 1.000000e+00 : f32
    %10 = vector.broadcast %cst_9 : f32 to vector<128x128xf32>
    %11 = arith.addf %10, %9 : vector<128x128xf32>
    %12 = arith.divf %10, %11 : vector<128x128xf32>
    %cst_10 = arith.constant dense<0.000000e+00> : vector<64x128xf32>
    %13 = tpu.matmul %6, %12, %cst_10 {dimension_numbers = #tpu.dot_dimension_numbers<[1], [0], [0], [1], [0, 0, 1, 1], [], []>} : vector<64x128xf32>, vector<128x128xf32>, vector<64x128xf32> -> vector<64x128xf32>
    %14 = vector.broadcast %7 : vector<64x1xf32> to vector<64x128xf32>
    %15 = arith.addf %13, %14 : vector<64x128xf32>
    %c0_11 = arith.constant 0 : index
    %c0_12 = arith.constant 0 : index
    %16 = vector.load %arg6[%c0_11, %c0_12] : memref<8x64xf32, #tpu.memory_space<vmem>>, vector<8x64xf32>
    %c0_13 = arith.constant 0 : index
    %c0_14 = arith.constant 0 : index
    %17 = vector.load %arg7[%c0_13, %c0_14] : memref<8x1xf32, #tpu.memory_space<vmem>>, vector<8x1xf32>
    %18 = arith.negf %15 : vector<64x128xf32>
    %19 = math.exp %18 : vector<64x128xf32>
    %cst_15 = arith.constant 1.000000e+00 : f32
    %20 = vector.broadcast %cst_15 : f32 to vector<64x128xf32>
    %21 = arith.addf %20, %19 : vector<64x128xf32>
    %22 = arith.divf %20, %21 : vector<64x128xf32>
    %cst_16 = arith.constant dense<0.000000e+00> : vector<8x128xf32>
    %23 = tpu.matmul %16, %22, %cst_16 {dimension_numbers = #tpu.dot_dimension_numbers<[1], [0], [0], [1], [0, 0, 1, 1], [], []>} : vector<8x64xf32>, vector<64x128xf32>, vector<8x128xf32> -> vector<8x128xf32>
    %24 = vector.broadcast %17 : vector<8x1xf32> to vector<8x128xf32>
    %25 = arith.addf %23, %24 : vector<8x128xf32>
    %c0_17 = arith.constant 0 : index
    %c0_18 = arith.constant 0 : index
    %26 = vector.load %arg8[%c0_17, %c0_18] : memref<8x128xf32, #tpu.memory_space<vmem>>, vector<8x128xf32>
    tpu.vector_store %arg8[%c0_17, %c0_18], %25 {strides = array<i32>} : memref<8x128xf32, #tpu.memory_space<vmem>>, vector<8x128xf32>,
    return
  }
  func.func @transform_0(%arg0: i32) -> (i32, i32) {
    %c0_i32 = arith.constant 0 : i32
    %c0_i32_0 = arith.constant 0 : i32
    return %c0_i32, %arg0 : i32, i32
  }
  func.func @transform_1(%arg0: i32) -> (i32, i32) {
    %c0_i32 = arith.constant 0 : i32
    %c0_i32_0 = arith.constant 0 : i32
    %c0_i32_1 = arith.constant 0 : i32
    return %c0_i32, %c0_i32_0 : i32, i32
  }
  func.func @transform_2(%arg0: i32) -> (i32, i32) {
    %c0_i32 = arith.constant 0 : i32
    %c0_i32_0 = arith.constant 0 : i32
    %c0_i32_1 = arith.constant 0 : i32
    return %c0_i32, %c0_i32_0 : i32, i32
  }
  func.func @transform_3(%arg0: i32) -> (i32, i32) {
    %c0_i32 = arith.constant 0 : i32
    %c0_i32_0 = arith.constant 0 : i32
    %c0_i32_1 = arith.constant 0 : i32
    return %c0_i32, %c0_i32_0 : i32, i32
  }
  func.func @transform_4(%arg0: i32) -> (i32, i32) {
    %c0_i32 = arith.constant 0 : i32
    %c0_i32_0 = arith.constant 0 : i32
    %c0_i32_1 = arith.constant 0 : i32
    return %c0_i32, %c0_i32_0 : i32, i32
  }
  func.func @transform_5(%arg0: i32) -> (i32, i32) {
    %c0_i32 = arith.constant 0 : i32
    %c0_i32_0 = arith.constant 0 : i32
    %c0_i32_1 = arith.constant 0 : i32
    return %c0_i32, %c0_i32_0 : i32, i32
  }
  func.func @transform_6(%arg0: i32) -> (i32, i32) {
    %c0_i32 = arith.constant 0 : i32
    %c0_i32_0 = arith.constant 0 : i32
    %c0_i32_1 = arith.constant 0 : i32
    return %c0_i32, %c0_i32_0 : i32, i32
  }
  func.func @transform_7(%arg0: i32) -> (i32, i32) {
    %c0_i32 = arith.constant 0 : i32
    %c0_i32_0 = arith.constant 0 : i32
    return %c0_i32, %arg0 : i32, i32
  }
}

</mosaic_0001>

<bundles_post_ra>
// kernel: tpu_custom_call.1
= control target key start
LH: loop header
LB: loop body
LE: loop exit
PB: predicated region body
PF: predicated region fallthrough
CT: control target
= control target key end

     0   :  { %12 = vsyncpa [#allocation3], 0  ;;  %s1795_s0 = inlined_call_operand.vmem [shape: f32[8,256], index: 0, kind: input, shape index: {}]   ;;  %s1796_s1 = inlined_call_operand.vmem [shape: f32[128,8], index: 1, kind: input, shape index: {}]   ;;  %s1797_s2 = inlined_call_operand.vmem [shape: f32[128,1], index: 2, kind: input, shape index: {}]   ;;  %s1798_s3 = inlined_call_operand.vmem [shape: f32[64,128], index: 3, kind: input, shape index: {}]   ;;  %s1799_s4 = inlined_call_operand.vmem [shape: f32[64,1], index: 4, kind: input, shape index: {}]   ;;  %s1800_s5 = inlined_call_operand.vmem [shape: f32[8,64], index: 5, kind: input, shape index: {}]   ;;  %s1801_s6 = inlined_call_operand.vmem [shape: f32[8,1], index: 6, kind: input, shape index: {}]   ;;  %s1802_s7 = inlined_call_operand.hbm [shape: f32[8,256], index: 7, kind: output, shape index: {}]  }
   0x1   :  { %14 = vsyncpa [#allocation3 + $0x1], 0  ;;  %s1525_s24 = smov 0   ;;  %s1527_s25 = smov 0  }
   0x2   :  { %s1529_s26 = smov 0   ;;  %s1531_s27 = smov 0  }
   0x3 LB: > { %s1546_s28 = sadd.s32 4294967295, %s1478_s27   ;;  %s1041_s29 = sadd.s32 4294967294, %s1478_s27   ;;  %s1478_s27 = sphi %s1531_s27, %s1808_s27   ;;  %s1474_s26 = sphi %s1529_s26, %s1807_s26   ;;  %s1470_s25 = sphi %s1527_s25, %s1806_s25   ;;  %s1466_s24 = sphi %s1525_s24, %s1805_s24  }
   0x4   : > { %s1550_s30 = sadd.s32 1, %s1478_s27   ;;  %s179_s8 = sadd.s32 1, %s1474_s26 }
   0x5   : > { %s176_s9 = ssub.s32 %s1478_s27, %s1550_s30  ;;  %p189_p0 = scmp.ne.s32.totalorder %s1474_s26, %s1470_s25 }
   0x6   : > { %p177_p1 = scmp.eq.s32.totalorder %s176_s9, 0  ;;  %p190_p2 = scmp.eq.s32.totalorder %s1546_s28, 1 }
   0x7   : > { %p195_p3 = scmp.ne.s32.totalorder %s1470_s25, %s1466_s24  ;;  %p196_p4 = scmp.eq.s32.totalorder %s1041_s29, 1 }
   0x8   : > { %s1561_s10 = scalar_select %p177_p1, %s1474_s26, %s179_s8  }
   0x9   : > { %p1563_p5 = por %p190_p2, %p189_p0  ;;  %p1567_p6 = por %p196_p4, %p195_p3 }
   0xa   : > { %p1044_p7 = scmp.ge.s32.totalorder %s1478_s27, 1  ;;  %p239_p8 = scmp.lt.s32.totalorder %s1478_s27, 3 }
   0xc   : > { %p240_p9 = pnand %p1044_p7, %p239_p8 }
   0xd   : > { %p270_p10 = scmp.lt.s32.totalorder (!%p240_p9), %s1546_s28, 1  ;;  %v274_v0 = vld [vmem:[%s1796_s1] sm:$0xff] (!%p240_p9)  ;;  %vm387_vm0 = vcmask (!%p240_p9), 64512   ;;  %v1480_v1 = vmov (!%p240_p9), 0   ;;  %v275_v4 = vld [vmem:[%s1796_s1 + $0x8] sm:$0xff] (!%p240_p9)  ;;  %v293_v5 = vld [vmem:[%s1797_s2 + $0x10] sm:$0xff] (!%p240_p9) }
   0xe   : > { %243 = sbr.rel (%p240_p9) target bundleno = 793 (0x319), region = 48  ;;  %1144 = vmatprep.mubr.msk.f32.mxu0 (!%p240_p9), %vm387_vm0, %v274_v0  ;;  %1318 = vset.pattern.permute.xlu0 (!%p240_p9), %v1480_v1  ;;  %v291_v2 = vld [vmem:[%s1797_s2] sm:$0xff] (!%p240_p9)  ;;  %v276_v6 = vld [vmem:[%s1796_s1 + $0x10] sm:$0xff] (!%p240_p9)  ;;  %v292_v7 = vld [vmem:[%s1797_s2 + $0x8] sm:$0xff] (!%p240_p9)  ;;  %vm1482_vm1 = vmmov (!%p240_p9), 0   ;;  %vm893_vm2 = vcmask (!%p240_p9), 523264  }
   0xf   : > { %1319 = vset.pattern.permute.xlu1 (!%p240_p9), %v1480_v1  ;;  %309 = vperm.xlu0 (!%p240_p9), %1318, %v291_v2   ;;  %v294_v8 = vld [vmem:[%s1797_s2 + $0x18] sm:$0xff] (!%p240_p9)  ;;  %v278_v10 = vld [vmem:[%s1796_s1 + $0x20] sm:$0xff] (!%p240_p9)  ;;  %v296_v12 = vld [vmem:[%s1797_s2 + $0x28] sm:$0xff] (!%p240_p9)  ;;  %s267_s20 = sand.u32 (!%p240_p9), 1, %s1470_s25   ;;  %s1089_s22 = sshll.u32 (!%p240_p9), %s1546_s28, 7 }
  0x10   : > { %319 = vperm.xlu1 (!%p240_p9), %1319, %v293_v5   ;;  %v277_v9 = vld [vmem:[%s1796_s1 + $0x18] sm:$0xff] (!%p240_p9)  ;;  %v295_v11 = vld [vmem:[%s1797_s2 + $0x20] sm:$0xff] (!%p240_p9)  ;;  %v279_v13 = vld [vmem:[%s1796_s1 + $0x28] sm:$0xff] (!%p240_p9)  ;;  %s1045_s21 = sshll.u32 (!%p240_p9), %s267_s20, 3  ;;  %s1753_s13 = scalar_lea.hbm (!%p240_p9), %s1802_s7, %s1089_s22 }
  0x11   : > { %v280_v14 = vld [vmem:[%s1796_s1 + $0x30] sm:$0xff] (!%p240_p9)  ;;  %v298_v16 = vld [vmem:[%s1797_s2 + $0x38] sm:$0xff] (!%p240_p9)  ;;  %v282_v18 = vld [vmem:[%s1796_s1 + $0x40] sm:$0xff] (!%p240_p9)  ;;  %s269_s23 = scalar_lea.vmem (!%p240_p9), [#allocation2], %s1045_s21  ;;  %s969_s14 = scalar_lea.sflag (!%p240_p9), [#allocation3], %s267_s20 }
  0x12   : > { %v297_v15 = vld [vmem:[%s1797_s2 + $0x30] sm:$0xff] (!%p240_p9)  ;;  %v281_v17 = vld [vmem:[%s1796_s1 + $0x38] sm:$0xff] (!%p240_p9)  ;;  %v299_v19 = vld [vmem:[%s1797_s2 + $0x40] sm:$0xff] (!%p240_p9)  ;;  %s982_s29 = sshll.u32 (!%p240_p9), %s269_s23, 4  ;;  %s1755_s29 = int_to_ptr.vmem [resolvable:$true] %s982_s29 }
  0x13   : > { %314 = vperm.xlu0 (!%p240_p9), %1318, %v292_v7   ;;  %v300_v20 = vld [vmem:[%s1797_s2 + $0x48] sm:$0xff] (!%p240_p9)  ;;  %v284_v22 = vld [vmem:[%s1796_s1 + $0x50] sm:$0xff] (!%p240_p9)  ;;  %v302_v24 = vld [vmem:[%s1797_s2 + $0x58] sm:$0xff] (!%p240_p9) }
  0x14   : > { %324 = vperm.xlu1 (!%p240_p9), %1319, %v294_v8   ;;  %v283_v21 = vld [vmem:[%s1796_s1 + $0x48] sm:$0xff] (!%p240_p9)  ;;  %v301_v23 = vld [vmem:[%s1797_s2 + $0x50] sm:$0xff] (!%p240_p9)  ;;  %v285_v25 = vld [vmem:[%s1796_s1 + $0x58] sm:$0xff] (!%p240_p9) }
  0x15   : > { %s271_s15 = scalar_select %p270_p10, %s1546_s28, 1  ;;  %v286_v26 = vld [vmem:[%s1796_s1 + $0x60] sm:$0xff]  ;;  %v304_v28 = vld [vmem:[%s1797_s2 + $0x68] sm:$0xff]  ;;  %v288_v30 = vld [vmem:[%s1796_s1 + $0x70] sm:$0xff] }
  0x16   : > { %v303_v27 = vld [vmem:[%s1797_s2 + $0x60] sm:$0xff]  ;;  %v287_v29 = vld [vmem:[%s1796_s1 + $0x68] sm:$0xff]  ;;  %v305_v31 = vld [vmem:[%s1797_s2 + $0x70] sm:$0xff]  ;;  %s1484_s28 = smov [#allocation2]  }
  0x17   : > { %s1046_s16 = sshll.u32 %s271_s15, 3  ;;  %329 = vperm.xlu0 %1318, %v295_v11   ;;  %v306_v32 = vld [vmem:[%s1797_s2 + $0x78] sm:$0xff]  ;;  %v589_v34 = vld [vmem:[%s1799_s4] sm:$0xff]  ;;  %v590_v35 = vld [vmem:[%s1799_s4 + $0x8] sm:$0xff]  ;;  %s1416_s15 = scalar_lea.vmem %s1755_s29, 128 }
  0x18   : > { %s273_s19 = scalar_lea.vmem %s1795_s0, %s1046_s16  ;;  %334 = vperm.xlu1 %1319, %v296_v12   ;;  %v289_v33 = vld [vmem:[%s1796_s1 + $0x78] sm:$0xff]  ;;  %v591_v36 = vld [vmem:[%s1799_s4 + $0x10] sm:$0xff]  ;;  %v593_v38 = vld [vmem:[%s1799_s4 + $0x20] sm:$0xff]  ;;  %p1417_p11 = scmp.ne.s32.totalorder %s1755_s29, %s1416_s15 }
  0x19   : > { %v290_v3 = vld [vmem:[%s273_s19] sm:$0xff]  ;;  %v592_v37 = vld [vmem:[%s1799_s4 + $0x18] sm:$0xff]  ;;  %v594_v39 = vld [vmem:[%s1799_s4 + $0x28] sm:$0xff]  ;;  %s1420_s16 = sshll.u32 %s1484_s28, 4  ;;  %s1421_s16 = int_to_ptr.vmem [resolvable:$false] %s1420_s16 }
  0x1a   : > { %1142 = vmatprep.subr.mxu0 %v290_v3  ;;  %v595_v40 = vld [vmem:[%s1799_s4 + $0x30] sm:$0xff]  ;;  %v596_v41 = vld [vmem:[%s1799_s4 + $0x38] sm:$0xff]  ;;  %v839_v42 = vld [vmem:[%s1801_s6] sm:$0xff]  ;;  %p1418_p12 = pnand %p1417_p11, %p1563_p5  ;;  %s1422_s17 = scalar_lea.vmem %s1421_s16, 256 }
  0x1b   : > { %1143 = vmatpush3.msra.mxu0 %v290_v3  ;;  %339 = vperm.xlu0 %1318, %v297_v15   ;;  %v581_v43 = vld [vmem:[%s1798_s3] sm:$0xff]  ;;  %p1423_p0 = scmp.lt.s32.totalorder %s1755_s29, %s1421_s16  ;;  %p1424_p1 = scmp.lt.s32.totalorder %s1422_s17, %s1416_s15 }
  0x1c   : > { %1145 = vmatmul.mubr.msk.f32.vlgmr.msra.gmra.mrb[0].mxu0 %vm387_vm0, %v275_v4  ;;  %344 = vperm.xlu1 %1319, %v298_v16   ;;  %p1419_p13 = pneg %p1418_p12 }
  0x1d   : > { %1147 = vmatprep.mubr.msk.f32.mxu0 %vm387_vm0, %v276_v6  ;;  %1200 = vmatprep.mubr.f32.mxu1 %v581_v43  ;;  %p1425_p2 = por %p1424_p1, %p1423_p0 }
  0x1f   : > { %349 = vperm.xlu0 %1318, %v299_v19   ;;  %p1426_p3 = pnand %p1425_p2, %p1419_p13 }
  0x20   : > { %1148 = vmatmul.mubr.msk.f32.gmra.mrb[2].mxu0 %vm387_vm0, %v277_v9  ;;  %354 = vperm.xlu1 %1319, %v300_v20  }
  0x21   : > { %1150 = vmatprep.mubr.msk.f32.mxu0 %vm387_vm0, %v278_v10 }
  0x23   : > { %359 = vperm.xlu0 %1318, %v301_v23  }
  0x24   : > { %1151 = vmatmul.mubr.msk.f32.gmra.mrb[4].mxu0 %vm387_vm0, %v279_v13  ;;  %364 = vperm.xlu1 %1319, %v302_v24  }
  0x25   : > { %1153 = vmatprep.mubr.msk.f32.mxu0 %vm387_vm0, %v280_v14 }
  0x27   : > { %369 = vperm.xlu0 %1318, %v303_v27  }
  0x28   : > { %1154 = vmatmul.mubr.msk.f32.gmra.mrb[6].mxu0 %vm387_vm0, %v281_v17  ;;  %374 = vperm.xlu1 %1319, %v304_v28  }
  0x29   : > { %1156 = vmatprep.mubr.msk.f32.mxu0 %vm387_vm0, %v282_v18 }
  0x2b   : > { %379 = vperm.xlu0 %1318, %v305_v31  }
  0x2c   : > { %1157 = vmatmul.mubr.msk.f32.gmra.mrb[8].mxu0 %vm387_vm0, %v283_v21  ;;  %384 = vperm.xlu1 %1319, %v306_v32  }
  0x2d   : > { %1159 = vmatprep.mubr.msk.f32.mxu0 %vm387_vm0, %v284_v22 }
  0x2f   : > { %695 = vperm.xlu0 %1318, %v589_v34  }
  0x30   : > { %1160 = vmatmul.mubr.msk.f32.gmra.mrb[10].mxu0 %vm387_vm0, %v285_v25  ;;  %700 = vperm.xlu1 %1319, %v590_v35  }
  0x31   : > { %1162 = vmatprep.mubr.msk.f32.mxu0 %vm387_vm0, %v286_v26 }
  0x33   : > { %705 = vperm.xlu0 %1318, %v591_v36  }
  0x34   : > { %1163 = vmatmul.mubr.msk.f32.gmra.mrb[12].mxu0 %vm387_vm0, %v287_v29  ;;  %710 = vperm.xlu1 %1319, %v592_v37  }
  0x35   : > { %1165 = vmatprep.mubr.msk.f32.mxu0 %vm387_vm0, %v288_v30 }
  0x37   : > { %715 = vperm.xlu0 %1318, %v593_v38  }
  0x38   : > { %1166 = vmatmul.mubr.msk.f32.gmra.mrb[14].mxu0 %vm387_vm0, %v289_v33  ;;  %720 = vperm.xlu1 %1319, %v594_v39  }
  0x3b   : > { %725 = vperm.xlu0 %1318, %v595_v40  }
  0x3c   : > { %730 = vperm.xlu1 %1319, %v596_v41  }
  0x3f   : > { %890 = vperm.xlu0 %1318, %v839_v42  }
  0x8e   : > { %v310_v45 = vpop.permute.xlu0 %309 }
  0x8f   : > { %v320_v44 = vpop.permute.xlu1 %319 }
  0x92   : > { %v315_v47 = vpop.permute.xlu0 %314 }
  0x93   : > { %v325_v46 = vpop.permute.xlu1 %324 }
  0x96   : > { %v330_v49 = vpop.permute.xlu0 %329 }
  0x97   : > { %v335_v48 = vpop.permute.xlu1 %334 }
  0x9a   : > { %v340_v58 = vpop.permute.xlu0 %339 }
  0x9b   : > { %v345_v55 = vpop.permute.xlu1 %344 }
  0x9e   : > { %v350_v5 = vpop.permute.xlu0 %349 }
  0x9f   : > { %v355_v3 = vpop.permute.xlu1 %354 }
  0xa2   : > { %v360_v19 = vpop.permute.xlu0 %359 }
  0xa3   : > { %v365_v15 = vpop.permute.xlu1 %364 }
  0xa6   : > { %v370_v36 = vpop.permute.xlu0 %369 }
  0xa7   : > { %v375_v33 = vpop.permute.xlu1 %374 }
  0xef   : > { %v1146_v50 = vpop.f32.mrb[0].mxu0 }
  0xf0   : > { %v508_v51 = vadd.f32 %v1146_v50, %v315_v47  ;;  %v502_v52 = vpop.f32.mrb[1].mxu0 }
  0xf1   : > { %v503_v53 = vadd.f32 %v502_v52, %v310_v45 }
  0xf2   : > { %v1064_v54 = vmul.f32 -1.442695, %v508_v51 }
  0xf3   : > { %v1063_v56 = vmul.f32 -1.442695, %v503_v53  ;;  %v1149_v57 = vpop.f32.mrb[2].mxu0 }
  0xf4   : > { %1320 = vpow2.f32 %v1064_v54  ;;  %v518_v59 = vadd.f32 %v1149_v57, %v325_v46  ;;  %v512_v60 = vpop.f32.mrb[3].mxu0  ;;  %v380_v54 = vpop.permute.xlu0 %379 }
  0xf5   : > { %1322 = vpow2.f32 %v1063_v56  ;;  %v513_v61 = vadd.f32 %v512_v60, %v320_v44 }
  0xf6   : > { %v1066_v62 = vmul.f32 -1.442695, %v518_v59 }
  0xf7   : > { %v1065_v63 = vmul.f32 -1.442695, %v513_v61  ;;  %v1152_v0 = vpop.f32.mrb[4].mxu0 }
  0xf8   : > { %1324 = vpow2.f32 %v1066_v62  ;;  %v528_v1 = vadd.f32 %v1152_v0, %v335_v48  ;;  %v522_v2 = vpop.f32.mrb[5].mxu0 }
  0xf9   : > { %1326 = vpow2.f32 %v1065_v63  ;;  %v523_v4 = vadd.f32 %v522_v2, %v330_v49  ;;  %v385_v49 = vpop.permute.xlu1 %384 }
  0xfa   : > { %v1068_v6 = vmul.f32 -1.442695, %v528_v1 }
  0xfb   : > { %v1067_v7 = vmul.f32 -1.442695, %v523_v4  ;;  %v1155_v8 = vpop.f32.mrb[6].mxu0 }
  0xfc   : > { %1328 = vpow2.f32 %v1068_v6  ;;  %v538_v9 = vadd.f32 %v1155_v8, %v345_v55  ;;  %v532_v10 = vpop.f32.mrb[7].mxu0 }
  0xfd   : > { %1330 = vpow2.f32 %v1067_v7  ;;  %v533_v11 = vadd.f32 %v532_v10, %v340_v58 }
  0xfe   : > { %v1321_v12 = vpop.eup %1320  ;;  %v1070_v13 = vmul.f32 -1.442695, %v538_v9 }
  0xff   : > { %v1323_v14 = vpop.eup %1322  ;;  %v646_v16 = vadd.f32 1.0, %v1321_v12  ;;  %v1069_v17 = vmul.f32 -1.442695, %v533_v11  ;;  %v1158_v18 = vpop.f32.mrb[8].mxu0 }
 0x100   : > { %v645_v20 = vadd.f32 1.0, %v1323_v14  ;;  %1332 = vpow2.f32 %v1070_v13  ;;  %v548_v21 = vadd.f32 %v1158_v18, %v355_v3  ;;  %v542_v22 = vpop.f32.mrb[9].mxu0 }
 0x101   : > { %1334 = vrcp.f32 %v646_v16  ;;  %v543_v23 = vadd.f32 %v542_v22, %v350_v5 }
 0x102   : > { %v1325_v24 = vpop.eup %1324  ;;  %1336 = vrcp.f32 %v645_v20  ;;  %v1072_v25 = vmul.f32 -1.442695, %v548_v21 }
 0x103   : > { %v1327_v26 = vpop.eup %1326  ;;  %v648_v27 = vadd.f32 1.0, %v1325_v24  ;;  %1338 = vpow2.f32 %v1069_v17  ;;  %v1071_v28 = vmul.f32 -1.442695, %v543_v23  ;;  %v1161_v29 = vpop.f32.mrb[10].mxu0 }
 0x104   : > { %v647_v30 = vadd.f32 1.0, %v1327_v26  ;;  %1340 = vpow2.f32 %v1072_v25  ;;  %v558_v31 = vadd.f32 %v1161_v29, %v365_v15  ;;  %v552_v32 = vpop.f32.mrb[11].mxu0 }
 0x105   : > { %1342 = vrcp.f32 %v648_v27  ;;  %v553_v34 = vadd.f32 %v552_v32, %v360_v19 }
 0x106   : > { %v1329_v35 = vpop.eup %1328  ;;  %1344 = vrcp.f32 %v647_v30  ;;  %v1074_v37 = vmul.f32 -1.442695, %v558_v31 }
 0x107   : > { %v1331_v38 = vpop.eup %1330  ;;  %v650_v39 = vadd.f32 1.0, %v1329_v35  ;;  %1346 = vpow2.f32 %v1071_v28  ;;  %v1073_v40 = vmul.f32 -1.442695, %v553_v34  ;;  %v1164_v41 = vpop.f32.mrb[12].mxu0 }
 0x108   : > { %v649_v42 = vadd.f32 1.0, %v1331_v38  ;;  %1348 = vpow2.f32 %v1074_v37  ;;  %v568_v43 = vadd.f32 %v1164_v41, %v375_v33  ;;  %v562_v44 = vpop.f32.mrb[13].mxu0  ;;  %v583_v37 = vld [vmem:[%s1798_s3 + $0x10] sm:$0xff]  ;;  %v584_v38 = vld [vmem:[%s1798_s3 + $0x18] sm:$0xff] }
 0x109   : > { %1350 = vrcp.f32 %v650_v39  ;;  %v563_v45 = vadd.f32 %v562_v44, %v370_v36  ;;  %v582_v36 = vld [vmem:[%s1798_s3 + $0x8] sm:$0xff]  ;;  %v585_v39 = vld [vmem:[%s1798_s3 + $0x20] sm:$0xff]  ;;  %v587_v41 = vld [vmem:[%s1798_s3 + $0x30] sm:$0xff]  ;;  %v1483_v44 = vmov 0.0  }
 0x10a   : > { %v1333_v46 = vpop.eup %1332  ;;  %1352 = vrcp.f32 %v649_v42  ;;  %v1076_v47 = vmul.f32 -1.442695, %v568_v43  ;;  %v588_v42 = vld [vmem:[%s1798_s3 + $0x38] sm:$0xff]  ;;  %v1481_v43 = vmov 0.0|0.0   ;;  %1228 = vmatprep.mubr.msk.f32.mxu0 %vm1482_vm1, %v1483_v44 }
 0x10b   : > { %v1335_v48 = vpop.eup %1334  ;;  %v652_v50 = vadd.f32 1.0, %v1333_v46  ;;  %1354 = vpow2.f32 %v1073_v40  ;;  %v1075_v51 = vmul.f32 -1.442695, %v563_v45  ;;  %v1167_v52 = vpop.f32.mrb[14].mxu0  ;;  %v586_v40 = vld [vmem:[%s1798_s3 + $0x28] sm:$0xff]  ;;  %1263 = vmatprep.subr.bf16.mxu0 %v1481_v43 }
 0x10c   : > { %v1337_v53 = vpop.eup %1336  ;;  %1356 = vpow2.f32 %v1076_v47  ;;  %v578_v55 = vadd.f32 %v1167_v52, %v385_v49  ;;  %v572_v56 = vpop.f32.mrb[15].mxu0 }
 0x10d   : > { %v1339_v57 = vpop.eup %1338  ;;  %1358 = vrcp.f32 %v652_v50  ;;  %v573_v58 = vadd.f32 %v572_v56, %v380_v54  ;;  %v1231_v59 = vpack.c.bf16 %v1335_v48, %v1337_v53  ;;  %v701_v45 = vpop.permute.xlu1 %700 }
 0x10e   : > { %v1341_v60 = vpop.eup %1340  ;;  %v651_v61 = vadd.f32 1.0, %v1339_v57  ;;  %1360 = vpow2.f32 %v1075_v51  ;;  %v1078_v62 = vmul.f32 -1.442695, %v578_v55  ;;  %v696_v46 = vpop.permute.xlu0 %695 }
 0x10f   : > { %v1343_v63 = vpop.eup %1342  ;;  %v654_v0 = vadd.f32 1.0, %v1341_v60  ;;  %v1077_v1 = vmul.f32 -1.442695, %v573_v58  ;;  %1232 = vmatprep.subr.bf16.mxu1 %v1231_v59 }
 0x110   : > { %v1345_v2 = vpop.eup %1344  ;;  %1362 = vrcp.f32 %v651_v61  ;;  %1234 = vmatpush3.bf16.msra.mxu1 %v1231_v59 }
 0x111   : > { %v1347_v3 = vpop.eup %1346  ;;  %1364 = vrcp.f32 %v654_v0  ;;  %v1235_v4 = vpack.c.bf16 %v1343_v63, %v1345_v2  ;;  %v711_v47 = vpop.permute.xlu1 %710 }
 0x112   : > { %v1349_v5 = vpop.eup %1348  ;;  %v653_v6 = vadd.f32 1.0, %v1347_v3  ;;  %1366 = vpow2.f32 %v1078_v62  ;;  %v706_v49 = vpop.permute.xlu0 %705 }
 0x113   : > { %v1351_v7 = vpop.eup %1350  ;;  %v656_v8 = vadd.f32 1.0, %v1349_v5  ;;  %1368 = vpow2.f32 %v1077_v1  ;;  %1236 = vmatprep.subr.bf16.mxu1 %v1235_v4 }
 0x114   : > { %v1353_v9 = vpop.eup %1352  ;;  %1370 = vrcp.f32 %v653_v6  ;;  %1238 = vmatpush3.bf16.msra.mxu1 %v1235_v4 }
 0x115   : > { %v1355_v10 = vpop.eup %1354  ;;  %v1239_v11 = vpack.c.bf16 %v1351_v7, %v1353_v9  ;;  %1372 = vrcp.f32 %v656_v8  ;;  %v721_v58 = vpop.permute.xlu1 %720 }
 0x116   : > { %v1357_v12 = vpop.eup %1356  ;;  %v655_v13 = vadd.f32 1.0, %v1355_v10  ;;  %v716_v60 = vpop.permute.xlu0 %715 }
 0x117   : > { %v1359_v14 = vpop.eup %1358  ;;  %v658_v15 = vadd.f32 1.0, %v1357_v12  ;;  %1240 = vmatprep.subr.bf16.mxu1 %v1239_v11 }
 0x118   : > { %v1361_v16 = vpop.eup %1360  ;;  %1374 = vrcp.f32 %v655_v13  ;;  %1242 = vmatpush3.bf16.msra.mxu1 %v1239_v11 }
 0x119   : > { %1376 = vrcp.f32 %v658_v15  ;;  %v657_v17 = vadd.f32 1.0, %v1361_v16  ;;  %v731_v4 = vpop.permute.xlu1 %730 }
 0x11a   : > { %v1363_v18 = vpop.eup %1362  ;;  %v726_v7 = vpop.permute.xlu0 %725 }
 0x11b   : > { %v1365_v19 = vpop.eup %1364  ;;  %1378 = vrcp.f32 %v657_v17  ;;  %v1243_v20 = vpack.c.bf16 %v1359_v14, %v1363_v18 }
 0x11c   : > { %v1367_v21 = vpop.eup %1366 }
 0x11d   : > { %v1369_v22 = vpop.eup %1368  ;;  %v660_v23 = vadd.f32 1.0, %v1367_v21  ;;  %1244 = vmatprep.subr.bf16.mxu1 %v1243_v20 }
 0x11e   : > { %v1371_v24 = vpop.eup %1370  ;;  %v659_v25 = vadd.f32 1.0, %v1369_v22  ;;  %1246 = vmatpush3.bf16.msra.mxu1 %v1243_v20 }
 0x11f   : > { %1380 = vrcp.f32 %v660_v23  ;;  %v1247_v26 = vpack.c.bf16 %v1365_v19, %v1371_v24  ;;  %v1373_v27 = vpop.eup %1372 }
 0x120   : > { %1382 = vrcp.f32 %v659_v25 }
 0x121   : > { %1248 = vmatprep.subr.bf16.mxu1 %v1247_v26 }
 0x122   : > { %v1375_v28 = vpop.eup %1374  ;;  %1250 = vmatpush3.bf16.msra.mxu1 %v1247_v26 }
 0x123   : > { %v1377_v29 = vpop.eup %1376  ;;  %v1251_v30 = vpack.c.bf16 %v1373_v27, %v1375_v28 }
 0x125   : > { %v1379_v31 = vpop.eup %1378  ;;  %1252 = vmatprep.subr.bf16.mxu1 %v1251_v30 }
 0x126   : > { %1254 = vmatpush3.bf16.msra.mxu1 %v1251_v30  ;;  %v1255_v32 = vpack.c.bf16 %v1377_v29, %v1379_v31 }
 0x128   : > { %1256 = vmatprep.subr.bf16.mxu1 %v1255_v32 }
 0x129   : > { %v1381_v33 = vpop.eup %1380 }
 0x12a   : > { %v1383_v34 = vpop.eup %1382  ;;  %1258 = vmatpush3.bf16.msra.mxu1 %v1255_v32 }
 0x12b   : > { %v1259_v35 = vpack.c.bf16 %v1381_v33, %v1383_v34 }
 0x12d   : > { %1260 = vmatprep.subr.bf16.mxu1 %v1259_v35 }
 0x12e   : > { %1262 = vmatpush3.bf16.msra.mxu1 %v1259_v35 }
 0x131   : > { %1201 = vmatmul.mubr.f32.vlgmr.msra.gmra.mrb[0].mxu1 %v582_v36 }
 0x132   : > { %1203 = vmatprep.mubr.f32.mxu1 %v583_v37 }
 0x135   : > { %1204 = vmatmul.mubr.f32.gmra.mrb[2].mxu1 %v584_v38 }
 0x136   : > { %1206 = vmatprep.mubr.f32.mxu1 %v585_v39 }
 0x139   : > { %1207 = vmatmul.mubr.f32.gmra.mrb[4].mxu1 %v586_v40 }
 0x13a   : > { %1209 = vmatprep.mubr.f32.mxu1 %v587_v41  ;;  %v838_v41 = vld [vmem:[%s1800_s5] sm:$0xff] }
 0x13d   : > { %1210 = vmatmul.mubr.f32.gmra.mrb[6].mxu1 %v588_v42  ;;  %v891_v42 = vpop.permute.xlu0 %890 }
 0x204   : > { %v1202_v48 = vpop.f32.mrb[0].mxu1 }
 0x205   : > { %v805_v50 = vadd.f32 %v1202_v48, %v701_v45  ;;  %v799_v51 = vpop.f32.mrb[1].mxu1 }
 0x206   : > { %v800_v52 = vadd.f32 %v799_v51, %v696_v46 }
 0x207   : > { %v1080_v53 = vmul.f32 -1.442695, %v805_v50 }
 0x208   : > { %v1079_v54 = vmul.f32 -1.442695, %v800_v52  ;;  %v1205_v55 = vpop.f32.mrb[2].mxu1 }
 0x209   : > { %1384 = vpow2.f32 %v1080_v53  ;;  %v815_v56 = vadd.f32 %v1205_v55, %v711_v47  ;;  %v809_v57 = vpop.f32.mrb[3].mxu1 }
 0x20a   : > { %1386 = vpow2.f32 %v1079_v54  ;;  %v810_v59 = vadd.f32 %v809_v57, %v706_v49 }
 0x20b   : > { %v1082_v61 = vmul.f32 -1.442695, %v815_v56 }
 0x20c   : > { %v1081_v62 = vmul.f32 -1.442695, %v810_v59  ;;  %v1208_v63 = vpop.f32.mrb[4].mxu1 }
 0x20d   : > { %1388 = vpow2.f32 %v1082_v61  ;;  %v825_v0 = vadd.f32 %v1208_v63, %v721_v58  ;;  %v819_v1 = vpop.f32.mrb[5].mxu1 }
 0x20e   : > { %1390 = vpow2.f32 %v1081_v62  ;;  %v820_v2 = vadd.f32 %v819_v1, %v716_v60 }
 0x20f   : > { %v1084_v3 = vmul.f32 -1.442695, %v825_v0 }
 0x210   : > { %v1083_v5 = vmul.f32 -1.442695, %v820_v2  ;;  %v1211_v6 = vpop.f32.mrb[6].mxu1 }
 0x211   : > { %1392 = vpow2.f32 %v1084_v3  ;;  %v835_v8 = vadd.f32 %v1211_v6, %v731_v4  ;;  %v829_v9 = vpop.f32.mrb[7].mxu1 }
 0x212   : > { %1394 = vpow2.f32 %v1083_v5  ;;  %v830_v10 = vadd.f32 %v829_v9, %v726_v7 }
 0x213   : > { %v1385_v11 = vpop.eup %1384  ;;  %v1086_v12 = vmul.f32 -1.442695, %v835_v8 }
 0x214   : > { %v1387_v13 = vpop.eup %1386  ;;  %v865_v14 = vadd.f32 1.0, %v1385_v11  ;;  %v1085_v15 = vmul.f32 -1.442695, %v830_v10 }
 0x215   : > { %v864_v16 = vadd.f32 1.0, %v1387_v13  ;;  %1396 = vpow2.f32 %v1086_v12 }
 0x216   : > { %1398 = vrcp.f32 %v865_v14 }
 0x217   : > { %v1389_v17 = vpop.eup %1388  ;;  %1400 = vrcp.f32 %v864_v16 }
 0x218   : > { %v1391_v18 = vpop.eup %1390  ;;  %v867_v19 = vadd.f32 1.0, %v1389_v17  ;;  %1402 = vpow2.f32 %v1085_v15 }
 0x219   : > { %v866_v20 = vadd.f32 1.0, %v1391_v18 }
 0x21a   : > { %1404 = vrcp.f32 %v867_v19 }
 0x21b   : > { %v1393_v21 = vpop.eup %1392  ;;  %1406 = vrcp.f32 %v866_v20 }
 0x21c   : > { %v1395_v22 = vpop.eup %1394  ;;  %v869_v23 = vadd.f32 1.0, %v1393_v21 }
 0x21d   : > { %v868_v24 = vadd.f32 1.0, %v1395_v22 }
 0x21e   : > { %1408 = vrcp.f32 %v869_v23 }
 0x21f   : > { %v1397_v25 = vpop.eup %1396  ;;  %1410 = vrcp.f32 %v868_v24 }
 0x220   : > { %v1399_v26 = vpop.eup %1398  ;;  %v871_v27 = vadd.f32 1.0, %v1397_v25 }
 0x221   : > { %v1401_v28 = vpop.eup %1400 }
 0x222   : > { %v1403_v29 = vpop.eup %1402  ;;  %v1264_v30 = vpack.c.bf16 %v1399_v26, %v1401_v28  ;;  %1412 = vrcp.f32 %v871_v27 }
 0x223   : > { %v870_v31 = vadd.f32 1.0, %v1403_v29 }
 0x224   : > { %v1405_v32 = vpop.eup %1404  ;;  %1265 = vmatpush3.bf16.msra.mxu0 %v1264_v30 }
 0x225   : > { %v1407_v33 = vpop.eup %1406  ;;  %1414 = vrcp.f32 %v870_v31  ;;  %1266 = vmatprep.subr.bf16.mxu0 %v1481_v43 }
 0x226   : > { %v1267_v34 = vpack.c.bf16 %v1405_v32, %v1407_v33 }
 0x228   : > { %v1409_v35 = vpop.eup %1408  ;;  %1268 = vmatpush3.bf16.msra.mxu0 %v1267_v34 }
 0x229   : > { %v1411_v36 = vpop.eup %1410  ;;  %1269 = vmatprep.subr.bf16.mxu0 %v1481_v43 }
 0x22a   : > { %v1270_v37 = vpack.c.bf16 %v1409_v35, %v1411_v36 }
 0x22c   : > { %1271 = vmatpush3.bf16.msra.mxu0 %v1270_v37  ;;  %v1413_v38 = vpop.eup %1412 }
 0x22d   : > { %1272 = vmatprep.subr.bf16.mxu0 %v1481_v43 }
 0x22f   : > { %v1415_v39 = vpop.eup %1414 }
 0x230   : > { %v1273_v40 = vpack.c.bf16 %v1413_v38, %v1415_v39 }
 0x232   : > { %1274 = vmatpush3.bf16.msra.mxu0 %v1273_v40 }
 0x235   : > { %1229 = vmatmul.mubr.msk.f32.vlgmr.msra.gmra.mrb[16].mxu0 %vm893_vm2, %v838_v41 }
 0x308   : > { %v963_v44 = vpop.f32.mrb[16].mxu0 }
 0x309   : > { %v964_v45 = vadd.f32 %v963_v44, %v891_v42  ;;  %v1230_v46 = vpop.f32.mrb[17].mxu0 }
 0x30b   : > { %967 = vst [vmem:[%s269_s23] sm:$0xff] %v964_v45 }
 0x30c   : > { %1429 = shalt.err (!%p1426_p3)
}
 0x30d   : > { %s1430_s18 = scalar_lea.hbm %s1753_s13, 128  ;;  %s1434_s21 = scalar_lea.hbm %s1802_s7, 256 }
 0x30e   : > { %p1431_p4 = scmp.ne.s32.totalorder %s1753_s13, %s1430_s18  ;;  %p1435_p9 = scmp.lt.u32.totalorder %s1753_s13, %s1802_s7 }
 0x30f   : > { %p1436_p10 = scmp.lt.u32.totalorder %s1434_s21, %s1430_s18  ;;  %p1438_p12 = scmp.lt.u32.totalorder %s1430_s18, %s1753_s13 }
 0x310   : > { %p1432_p7 = pnand %p1431_p4, %p1563_p5 }
 0x311   : > { %p1437_p11 = por %p1436_p10, %p1435_p9 }
 0x312   : > { %p1433_p8 = pneg %p1432_p7 }
 0x313   : > { %p1439_p13 = por %p1438_p12, %p1437_p11 }
 0x315   : > { %p1440_p0 = pnand %p1439_p13, %p1433_p8 }
 0x317   : > { %1443 = shalt.err (!%p1440_p0)
}
 0x318   : > { %1275 = dma.vmem_to_hbm [thread:$0]  (%p1563_p5), %s1755_s29, 128, %s1753_s13, %s969_s14  }
 0x319 PF: > { %p1281_p1 = scmp.ge.s32.totalorder %s1478_s27, 2  ;;  %s994_s8 = sand.u32 1, %s1466_s24  }
 0x31a   : > { %s995_s9 = scalar_lea.sflag [#allocation3], %s994_s8 }
 0x31b   : > { %p1278_p2 = pnand %p1281_p1, %p1567_p6 }
 0x31d   : > { %1461 = dma.done.wait (!%p1278_p2), %s995_s9, 128  }
 0x31e   : > { %1463 = vsyncadd (!%p1278_p2), %s995_s9, 4294967168  ;;  %p17_p3 = scmp.ge.s32.totalorder %s1550_s30, 4   ;;  %s1805_s24 = smov %s1470_s25 }
 0x31f   : > { %s1806_s25 = smov %s1474_s26  ;;  %s1807_s26 = smov %s1561_s10 }
 0x320   : > { %s1808_s27 = smov %s1550_s30  ;;  %19 = sbr.rel (!%p17_p3) target bundleno = 3 (0x3), region = 83 }
 0x327   :  { %1000 = vsyncpa [#allocation3], 1 }
 0x328   :  { %1002 = vsyncpa [#allocation3 + $0x1], 1 }

</bundles_post_ra>
